<compile_context>
chip_gen: v7x
topology: tpu7x:2x2x1
jax: 0.10.0
libtpu: 0.0.40
codegen_flags: <defaults>
</compile_context>

<pallas_src>
import functools

import jax
import jax.numpy as jnp
from jax.experimental import pallas as pl
from jax.experimental.pallas import tpu as pltpu


def _cdiv(a, b):
    return -(-a // b)


def _round_up(a, b):
    return _cdiv(a, b) * b


def _label_smooth_kernel(x_ref, tgt_ref, out_ref, *, n_rows, on_value,
                         off_value, w_sum):
    x = x_ref[...]                                           # (tn, C) native dtype
    tn, c = x.shape
    xf = x.astype(jnp.float32)                               # f32 compute tile

    # logsumexp over the class (lane) axis.
    m = jnp.max(xf, axis=-1, keepdims=True)                  # (tn, 1)
    lse = jnp.log(jnp.sum(jnp.exp(xf - m), axis=-1, keepdims=True))
    logz = m + lse                                           # (tn, 1)

    # Fused smoothed-one-hot weighted reduction (single pass over the tile):
    #   per_row = sum(w)*logz - sum_c(w_c * x_c),  w_c = off + (on-off)*[c==tgt]
    col_ids = jax.lax.broadcasted_iota(jnp.int32, (tn, c), 1)
    tgt = tgt_ref[...]                                       # (tn, 1) int32
    w = jnp.where(col_ids == tgt, jnp.float32(on_value), jnp.float32(off_value))
    wx = jnp.sum(w * xf, axis=-1, keepdims=True)             # (tn, 1)

    loss_rows = logz if w_sum == 1.0 else jnp.float32(w_sum) * logz
    loss_rows = loss_rows - wx                                # (tn, 1)

    # Mask the ragged tail rows (no wrapper-side padding of the logits; the
    # out-of-bounds rows of the boundary block contain garbage).
    row_ids = (pl.program_id(0) * tn
               + jax.lax.broadcasted_iota(jnp.int32, (tn, 1), 0))
    loss_rows = jnp.where(row_ids < n_rows, loss_rows, 0.0)

    # Lane-dense per-tile partial sum: splat one f32 into the (1, 8, 128) block.
    partial = jnp.sum(loss_rows).astype(jnp.float32)
    out_ref[...] = jnp.broadcast_to(partial, out_ref.shape)


def label_smooth_loss(logits, target, smoothing=0.0, tile_n=None):
    """logits: (..., C) float; target: (...,) int class indices. Scalar f32 loss."""
    c = logits.shape[-1]
    x = logits.reshape(-1, c)
    tgt2d = target.reshape(-1, 1).astype(jnp.int32)
    n = x.shape[0]
    itemsize = jnp.dtype(x.dtype).itemsize
    row_align = 8 * max(1, 4 // itemsize)         # 8 f32 / 16 bf16 / 32 int8,fp8

    try:
        vmem_cap = int(pltpu.get_tpu_info().vmem_capacity_bytes)
    except Exception:                             # conservative fallback: v7x per-TC
        vmem_cap = 64 << 20

    n_ceil = _round_up(n, row_align)
    if tile_n is None:
        # ~40% of VMEM for the double-buffered logits tile PLUS the in-kernel
        # temporaries (~3 tile-sized f32/int32 copies: upcast, iota/weight,
        # weighted product).
        budget = (vmem_cap * 2) // 5
        bytes_per_row = c * (2 * itemsize + 3 * 4) + 64
        tn = max(row_align,
                 min(2048, (budget // bytes_per_row) // row_align * row_align))
        tn = min(tn, n_ceil)
        if n_ceil >= 2 * row_align:
            # Keep >= 2 grid steps so v7x's two TensorCores both get work.
            tn = min(tn, _round_up(_cdiv(n, 2), row_align))
    else:
        tn = max(row_align, (int(tile_n) // row_align) * row_align)
        tn = min(tn, n_ceil)

    num_tiles = _cdiv(n, tn)

    on_value = float(1.0 - smoothing)
    off_value = float(smoothing / (c - 1.0)) if c > 1 else 0.0
    w_sum = 1.0 if c > 1 else on_value            # C == 1 degenerate case

    vmem_limit = int(max(32 << 20, min((vmem_cap * 3) // 5, 96 << 20)))

    partials = pl.pallas_call(
        functools.partial(_label_smooth_kernel, n_rows=n, on_value=on_value,
                          off_value=off_value, w_sum=w_sum),
        out_shape=jax.ShapeDtypeStruct((num_tiles, 8, 128), jnp.float32),
        grid_spec=pl.GridSpec(
            grid=(num_tiles,),
            in_specs=[
                pl.BlockSpec((tn, c), lambda i: (i, 0)),
                pl.BlockSpec((tn, 1), lambda i: (i, 0)),
            ],
            out_specs=pl.BlockSpec((1, 8, 128), lambda i: (i, 0, 0)),
        ),
        compiler_params=pltpu.CompilerParams(
            dimension_semantics=("parallel",),
            vmem_limit_bytes=vmem_limit,
        ),
    )(x, tgt2d)

    # Final reduction over num_tiles scalars; divide by the true N exactly once.
    return jnp.sum(partials[:, 0, 0]) / jnp.float32(n)


def _reference(logits, target, smoothing):
    log_prob = jax.nn.log_softmax(logits.astype(jnp.float32), axis=-1)
    c = logits.shape[-1]
    off = smoothing / (c - 1.0) if c > 1 else 0.0
    weight = jnp.full(logits.shape, off, dtype=jnp.float32)
    one_hot = jax.nn.one_hot(target, c, dtype=jnp.float32)
    weight = weight * (1.0 - one_hot) + one_hot * (1.0 - smoothing)
    return (-weight * log_prob).sum(axis=-1).mean()


if __name__ == "__main__":
    key = jax.random.PRNGKey(0)
    k1, k2, k3, k4, k5, k6, k7, k8 = jax.random.split(key, 8)
    smoothing = 0.1

    # Case 1: single-tile path (module contract: (N, C) logits, (N,) targets).
    n1, c1 = 8, 32
    logits1 = jax.random.normal(k1, (n1, c1), dtype=jnp.float32)
    target1 = jax.random.randint(k2, (n1,), 0, c1, dtype=jnp.int32)
    loss1 = jax.block_until_ready(label_smooth_loss(logits1, target1, smoothing))
    ref1 = _reference(logits1, target1, smoothing)
    assert jnp.allclose(loss1, ref1, atol=1e-5, rtol=1e-5), (loss1, ref1)

    # Case 2: multi-tile "parallel" grid (forced small tile, N divisible).
    n2, c2 = 24, 160
    logits2 = jax.random.normal(k3, (n2, c2), dtype=jnp.float32)
    target2 = jax.random.randint(k4, (n2,), 0, c2, dtype=jnp.int32)
    loss2 = jax.block_until_ready(
        label_smooth_loss(logits2, target2, smoothing, tile_n=8))
    ref2 = _reference(logits2, target2, smoothing)
    assert jnp.allclose(loss2, ref2, atol=1e-5, rtol=1e-5), (loss2, ref2)

    # Case 3: ragged last tile (N not a multiple of the tile) -> in-kernel mask.
    n3, c3 = 10, 96
    logits3 = jax.random.normal(k5, (n3, c3), dtype=jnp.float32)
    target3 = jax.random.randint(k6, (n3,), 0, c3, dtype=jnp.int32)
    loss3 = jax.block_until_ready(
        label_smooth_loss(logits3, target3, smoothing, tile_n=8))
    ref3 = _reference(logits3, target3, smoothing)
    assert jnp.allclose(loss3, ref3, atol=1e-5, rtol=1e-5), (loss3, ref3)

    # Case 4: bf16 logits on the default (auto-sized, >=2-tile, ragged) path.
    n4, c4 = 20, 256
    logits4 = jax.random.normal(k7, (n4, c4), dtype=jnp.float32).astype(jnp.bfloat16)
    target4 = jax.random.randint(k8, (n4,), 0, c4, dtype=jnp.int32)
    loss4 = jax.block_until_ready(label_smooth_loss(logits4, target4, smoothing))
    ref4 = _reference(logits4, target4, smoothing)
    assert jnp.allclose(loss4, ref4, atol=1e-4, rtol=1e-4), (loss4, ref4)

    print("KERNEL_OK")
</pallas_src>

<mosaic_0001>
module attributes {stable_mosaic.version = 11 : i64} {
  func.func @_label_smooth_kernel(%arg0: i32, %arg1: memref<8x32xf32, #tpu.memory_space<vmem>>, %arg2: memref<8x1xi32, #tpu.memory_space<vmem>>, %arg3: memref<1x8x128xf32, #tpu.memory_space<vmem>>) attributes {dimension_semantics = [#tpu.dimension_semantics<parallel>], iteration_bounds = array<i64: 1>, scalar_prefetch = 0 : i64, scratch_operands = 0 : i64, tpu.core_type = #tpu.core_type<tc>, window_params = [{transform_indices = @transform_0, window_bounds = array<i64: 8, 32>}, {transform_indices = @transform_1, window_bounds = array<i64: 8, 1>}, {transform_indices = @transform_2, window_bounds = array<i64: 1, 8, 128>}]} {
    %c0 = arith.constant 0 : index
    %c0_0 = arith.constant 0 : index
    %0 = vector.load %arg1[%c0, %c0_0] : memref<8x32xf32, #tpu.memory_space<vmem>>, vector<8x32xf32>
    %cst = arith.constant dense<0xFF800000> : vector<8xf32>
    %1 = vector.multi_reduction <maximumf>, %0, %cst [1] : vector<8x32xf32> to vector<8xf32>
    %2 = vector.shape_cast %1 : vector<8xf32> to vector<8x1xf32>
    %3 = vector.broadcast %2 : vector<8x1xf32> to vector<8x32xf32>
    %4 = arith.subf %0, %3 : vector<8x32xf32>
    %5 = math.exp %4 : vector<8x32xf32>
    %cst_1 = arith.constant dense<0.000000e+00> : vector<8xf32>
    %6 = vector.multi_reduction <add>, %5, %cst_1 [1] : vector<8x32xf32> to vector<8xf32>
    %7 = vector.shape_cast %6 : vector<8xf32> to vector<8x1xf32>
    %8 = math.log %7 : vector<8x1xf32>
    %9 = arith.addf %2, %8 : vector<8x1xf32>
    %10 = tpu.iota {dimensions = array<i32: 1>} : vector<8x32xi32>
    %c0_2 = arith.constant 0 : index
    %c0_3 = arith.constant 0 : index
    %11 = vector.load %arg2[%c0_2, %c0_3] : memref<8x1xi32, #tpu.memory_space<vmem>>, vector<8x1xi32>
    %12 = vector.broadcast %11 : vector<8x1xi32> to vector<8x32xi32>
    %13 = arith.cmpi eq, %10, %12 : vector<8x32xi32>
    %cst_4 = arith.constant 0.899999976 : f32
    %cst_5 = arith.constant 0.0032258064 : f32
    %14 = vector.broadcast %cst_4 : f32 to vector<8x32xf32>
    %15 = vector.broadcast %cst_5 : f32 to vector<8x32xf32>
    %16 = arith.select %13, %14, %15 : vector<8x32xi1>, vector<8x32xf32>
    %17 = arith.mulf %16, %0 : vector<8x32xf32>
    %cst_6 = arith.constant dense<0.000000e+00> : vector<8xf32>
    %18 = vector.multi_reduction <add>, %17, %cst_6 [1] : vector<8x32xf32> to vector<8xf32>
    %19 = vector.shape_cast %18 : vector<8xf32> to vector<8x1xf32>
    %20 = arith.subf %9, %19 : vector<8x1xf32>
    %c8_i32 = arith.constant 8 : i32
    %21 = arith.muli %arg0, %c8_i32 : i32
    %22 = tpu.iota {dimensions = array<i32: 0>} : vector<8x1xi32>
    %23 = vector.broadcast %21 : i32 to vector<8x1xi32>
    %24 = arith.addi %23, %22 : vector<8x1xi32>
    %c8_i32_7 = arith.constant 8 : i32
    %25 = vector.broadcast %c8_i32_7 : i32 to vector<8x1xi32>
    %26 = arith.cmpi slt, %24, %25 : vector<8x1xi32>
    %cst_8 = arith.constant 0.000000e+00 : f32
    %27 = vector.broadcast %cst_8 : f32 to vector<8x1xf32>
    %28 = arith.select %26, %20, %27 : vector<8x1xi1>, vector<8x1xf32>
    %29 = vector.shape_cast %28 : vector<8x1xf32> to vector<1x8x1xf32>
    %cst_9 = arith.constant dense<0.000000e+00> : vector<1xf32>
    %30 = vector.multi_reduction <add>, %29, %cst_9 [1, 2] : vector<1x8x1xf32> to vector<1xf32>
    %31 = vector.shape_cast %30 : vector<1xf32> to vector<1x1x1xf32>
    %32 = vector.extract %31[0, 0, 0] : f32 from vector<1x1x1xf32>
    %33 = vector.broadcast %32 : f32 to vector<1x8x128xf32>
    %c0_10 = arith.constant 0 : index
    %c0_11 = arith.constant 0 : index
    %c0_12 = arith.constant 0 : index
    %34 = vector.load %arg3[%c0_10, %c0_11, %c0_12] : memref<1x8x128xf32, #tpu.memory_space<vmem>>, vector<1x8x128xf32>
    tpu.vector_store %arg3[%c0_10, %c0_11, %c0_12], %33 {strides = array<i32>} : memref<1x8x128xf32, #tpu.memory_space<vmem>>, vector<1x8x128xf32>,
    return
  }
  func.func @transform_0(%arg0: i32) -> (i32, i32) {
    %c0_i32 = arith.constant 0 : i32
    %c0_i32_0 = arith.constant 0 : i32
    return %arg0, %c0_i32 : i32, i32
  }
  func.func @transform_1(%arg0: i32) -> (i32, i32) {
    %c0_i32 = arith.constant 0 : i32
    %c0_i32_0 = arith.constant 0 : i32
    return %arg0, %c0_i32 : i32, i32
  }
  func.func @transform_2(%arg0: i32) -> (i32, i32, i32) {
    %c0_i32 = arith.constant 0 : i32
    %c0_i32_0 = arith.constant 0 : i32
    %c0_i32_1 = arith.constant 0 : i32
    return %arg0, %c0_i32, %c0_i32_0 : i32, i32, i32
  }
}

</mosaic_0001>

<bundles_post_ra>
// kernel: tpu_custom_call.1
= control target key start
LH: loop header
LB: loop body
LE: loop exit
PB: predicated region body
PF: predicated region fallthrough
CT: control target
= control target key end

     0   :  { %vm13_vm0 = vcmask 261120   ;;  %s146_s0 = inlined_call_operand.vmem [shape: f32[8,32], index: 0, kind: input, shape index: {}]   ;;  %s147_s1 = inlined_call_operand.vmem [shape: s32[8,1], index: 1, kind: input, shape index: {}]   ;;  %s148_s2 = inlined_call_operand.hbm [shape: f32[1,8,128], index: 2, kind: output, shape index: {}]  }
   0x1   :  { %v12_v0 = vld [vmem:[%s146_s0] sm:$0xff] }
   0x2   :  { %7 = vsyncpa [#allocation3], 0  ;;  %v14_v1 = vsel %vm13_vm0, %v12_v0, -inf  ;;  %v107_v2 = vmov 0   ;;  %v28_v3 = vld [vmem:[%s147_s1] sm:$0xff]  ;;  %v26_v6 = vlaneseq  ;;  %vm46_vm2 = vcmask 7168  }
   0x3   :  { %78 = vset.pattern.permute.xlu0 %v107_v2  ;;  %v108_v10 = vmov 0.0032258064   ;;  %s109_s0 = smov [#allocation2]  }
   0x4   :  { %15 = vmax.xlane.f32.xlu0 %v14_v1  ;;  %v27_v8 = vand.u32 127, %v26_v6  ;;  %s65_s1 = sshll.u32 %s109_s0, 4  ;;  %s66_s1 = int_to_ptr.vmem [resolvable:$true] %s65_s1 }
   0x5   :  { %s83_s14 = scalar_lea.vmem %s66_s1, 128  ;;  %p88_p1 = scmp.lt.s32.totalorder %s66_s1, %s66_s1 }
   0x6   :  { %p84_p0 = scmp.ne.s32.totalorder %s66_s1, %s83_s14  ;;  %p89_p2 = scmp.lt.s32.totalorder %s83_s14, %s83_s14 }
   0x8   :  { %p90_p3 = por %p89_p2, %p88_p1 }
   0xa   :  { %p91_p4 = pnand %p90_p3, %p84_p0 }
  0x1a   :  { %30 = vperm.xlu0 %78, %v28_v3  }
  0x91   :  { %v16_v4 = vpop.xlane.xlu0 %15 }
  0x92   :  { %v17_v5 = vsub.f32 %v12_v0, %v16_v4 }
  0x94   :  { %v18_v7 = vmul.f32 1.442695, %v17_v5 }
  0x96   :  { %79 = vpow2.f32 %v18_v7 }
  0x99   :  { %v31_v9 = vpop.permute.xlu0 %30 }
  0x9a   :  { %vm32_vm1 = vcmp.eq.s32.totalorder %v27_v8, %v31_v9 }
  0x9b   :  { %v33_v11 = vsel %vm32_vm1, 0.9, %v108_v10 }
  0x9c   :  { %v34_v12 = vmul.f32 %v33_v11, %v12_v0 }
  0x9e   :  { %v35_v15 = vsel %vm13_vm0, %v34_v12, 0.0 }
  0xa0   :  { %v80_v13 = vpop.eup %79 }
  0xa1   :  { %v20_v14 = vsel %vm13_vm0, %v80_v13, 0.0 }
  0xa2   :  { %21 = vadd.xlane.f32.xlu1 %v20_v14 }
  0xa6   :  { %36 = vadd.xlane.f32.xlu1 %v35_v15 }
 0x12f   :  { %v22_v16 = vpop.xlane.xlu1 %21 }
 0x130   :  { %81 = vlog2.f32 %v22_v16 }
 0x133   :  { %v37_v19 = vpop.xlane.xlu1 %36 }
 0x13a   :  { %v82_v17 = vpop.eup %81 }
 0x13b   :  { %v24_v18 = vmul.f32 0.6931472, %v82_v17 }
 0x13d   :  { %v25_v20 = vadd.f32 %v24_v18, %v16_v4 }
 0x13f   :  { %v38_v21 = vsub.f32 %v25_v20, %v37_v19 }
 0x141   :  { %v47_v22 = vsel %vm46_vm2, %v38_v21, 0.0 }
 0x142   :  { %48 = vadd.xlane.f32.xlu1 %v47_v22 }
 0x1cf   :  { %v49_v23 = vpop.xlane.xlu1 %48 }
 0x1d0   :  { %v50_v24 = vrot.slane %v49_v23, 4 }
 0x1d2   :  { %v51_v25 = vadd.f32 %v50_v24, %v49_v23 }
 0x1d4   :  { %v52_v26 = vrot.slane %v51_v25, 2 }
 0x1d6   :  { %v53_v27 = vadd.f32 %v52_v26, %v51_v25 }
 0x1d8   :  { %v54_v28 = vrot.slane %v53_v27, 1 }
 0x1da   :  { %v55_v29 = vadd.f32 %v54_v28, %v53_v27 }
 0x1dc   :  { %73 = vpush %v55_v29 }
 0x20d   :  { %s74_s13 = spop %73 }
 0x20e   :  { %v57_v30 = vstv %s74_s13 }
 0x20f   :  { %58 = vst [vmem:[#allocation2] sm:$0xff] %v57_v30 }
 0x210   :  { %94 = shalt.err (!%p91_p4)
}
 0x211   :  { %s95_s17 = scalar_lea.hbm %s148_s2, 128 }
 0x212   :  { %p96_p5 = scmp.ne.s32.totalorder %s148_s2, %s95_s17  ;;  %p99_p6 = scmp.lt.u32.totalorder %s95_s17, %s148_s2 }
 0x214   :  { %p101_p7 = pnand %p99_p6, %p96_p5 }
 0x216   :  { %104 = shalt.err (!%p101_p7)
}
 0x217   :  { %68 = dma.vmem_to_hbm [thread:$0]  %s66_s1, 128, %s148_s2, [#allocation3]  }
 0x218   :  { %105 = dma.done.wait [#allocation3], 128  }
 0x219   :  { %106 = vsyncadd [#allocation3], 4294967168 }
 0x21a   :  { %72 = vsyncpa [#allocation3], 1 }

</bundles_post_ra>
